<compile_context>
chip_gen: v7x
topology: tpu7x:2x2x1
jax: 0.10.0
libtpu: 0.0.40
codegen_flags: <defaults>
</compile_context>

<pallas_src>
import functools

import jax
import jax.numpy as jnp
from jax import lax
from jax.experimental import pallas as pl
from jax.experimental.pallas import tpu as pltpu


def _round_up(x, m):
    return ((x + m - 1) // m) * m


def _conv_bn_prelu_kernel(alpha_ref, w_ref, b_ref, x_ref, o_ref, *,
                          tap_offsets, tile, apply_prelu):
    """One grid step: folded-BN conv (tap accumulation) + bias + PReLU.

    alpha_ref: SMEM (1,) f32          -- shared PReLU alpha
    w_ref:     VMEM (T, C_out, C_in)  -- per-tap folded conv weight (compute dtype)
    b_ref:     VMEM (C_out, 1) f32    -- folded bias
    x_ref:     VMEM (1, C_in, L)      -- flat (phase-rearranged) input window
    o_ref:     VMEM (1, C_out, tile)  -- lane-dense output tile (tile % 128 == 0)
    """
    xv = x_ref[0]                                    # (C_in, L)
    acc = None
    # Static, fully unrolled tap loop (k*k taps; 1 tap for 1x1 conv).
    for i, off in enumerate(tap_offsets):
        rhs = xv[:, off:off + tile]                  # static-offset slice in VMEM
        c = jnp.dot(w_ref[i], rhs, preferred_element_type=jnp.float32)
        acc = c if acc is None else acc + c
    y = acc + b_ref[...]
    if apply_prelu:
        a = alpha_ref[0]                             # scalar read from SMEM
        y = jnp.where(y > 0, y, y * a)
    o_ref[0] = y.astype(o_ref.dtype)


def conv_bn_prelu(x, params, *, k=1, s=1, p=0, bn=True, prelu=True, eps=1e-5,
                  compute_dtype=jnp.bfloat16, out_dtype=jnp.float32,
                  max_tile=2048):
    """x: (N, C_in, H, W) float -> (N, C_out, Ho, Wo) out_dtype."""
    w, b, gamma, beta, mean, var, alpha = params
    N, C_in, H, W = x.shape
    C_out = w.shape[0]

    # ---- Fold eval-mode BatchNorm into the conv (param-side, f32). ----
    if bn:
        inv = gamma * lax.rsqrt(var + eps)             # (C_out,)
        w_eff = w * inv[:, None, None, None]
        b_eff = (b - mean) * inv + beta
    else:
        w_eff, b_eff = w, b

    Ho = (H + 2 * p - k) // s + 1
    Wo = (W + 2 * p - k) // s + 1
    Hp, Wp = H + 2 * p, W + 2 * p

    # ---- Input rearrangement (one fused XLA pass: cast + pad (+ phase)). ----
    xc = x.astype(compute_dtype)
    if p:
        xc = jnp.pad(xc, ((0, 0), (0, 0), (p, p), (p, p)))
    if s == 1:
        pitch = Wp
        xs = xc                                        # (N, C, Hp, Wp)
        Hq = Wq = None
    else:
        # Space-to-phase: row q*Hq + r holds original row r*s + q (same for
        # cols), so every conv tap becomes a constant flat offset even when
        # stride > 1.  Costs one read+write of x (vs. k^2 for HBM im2col).
        Hq, Wq = -(-Hp // s), -(-Wp // s)
        hpad, wpad = Hq * s - Hp, Wq * s - Wp
        if hpad or wpad:
            xc = jnp.pad(xc, ((0, 0), (0, 0), (0, hpad), (0, wpad)))
        xs = (xc.reshape(N, C_in, Hq, s, Wq, s)
                .transpose(0, 1, 3, 2, 5, 4)
                .reshape(N, C_in, s * Hq, s * Wq))
        pitch = s * Wq
    Hs, Ws = xs.shape[2], xs.shape[3]

    # Static flat offset of every conv tap (di, dj) in the rearranged layout.
    if s == 1:
        offs = tuple(di * pitch + dj for di in range(k) for dj in range(k))
    else:
        offs = tuple(((di % s) * Hq + di // s) * pitch + (dj % s) * Wq + dj // s
                     for di in range(k) for dj in range(k))
    T = len(offs)
    max_off = max(offs)

    # Per-tap folded weights (T, C_out, C_in), bias, PReLU alpha.
    w_taps = (w_eff.transpose(2, 3, 0, 1).reshape(T, C_out, C_in)
              .astype(compute_dtype))
    b_vec = b_eff.reshape(C_out, 1).astype(jnp.float32)
    alpha_arr = jnp.asarray(alpha, jnp.float32).reshape(1)

    # Flat output window: output (ho, wo) lives at flat position ho*pitch + wo.
    P = Ho * pitch
    in_isz = jnp.dtype(compute_dtype).itemsize
    out_isz = jnp.dtype(out_dtype).itemsize

    if max_off == 0:
        # 1x1 conv: zero halo -> tile the flat spatial axis (scales to any HW).
        tile = min(max_tile, _round_up(P, 128))
        while tile > 128 and 2 * tile * (C_in * in_isz + C_out * out_isz) > (32 << 20):
            tile = max(128, tile // 2)
        P_pad = _round_up(P, tile)
        Lx = P_pad
        grid = (N, P_pad // tile)
        x_spec = pl.BlockSpec((1, C_in, tile), lambda n, t: (n, 0, t))
        o_spec = pl.BlockSpec((1, C_out, tile), lambda n, t: (n, 0, t))
        w_spec = pl.BlockSpec((T, C_out, C_in), lambda n, t: (0, 0, 0))
        b_spec = pl.BlockSpec((C_out, 1), lambda n, t: (0, 0))
        dims = ("parallel", "parallel")
    else:
        # k > 1: whole-image flat block stays VMEM-resident; conv taps are
        # static offset slices accumulated in-kernel (no HBM im2col tensor).
        tile = _round_up(P, 128)
        P_pad = tile
        Lx = _round_up(P_pad + max_off, 128)
        grid = (N,)
        x_spec = pl.BlockSpec((1, C_in, Lx), lambda n: (n, 0, 0))
        o_spec = pl.BlockSpec((1, C_out, tile), lambda n: (n, 0, 0))
        w_spec = pl.BlockSpec((T, C_out, C_in), lambda n: (0, 0, 0))
        b_spec = pl.BlockSpec((C_out, 1), lambda n: (0, 0))
        dims = ("parallel",)

    # Flat input padded/truncated to exactly Lx columns.  Padding is zeros and
    # only feeds flat positions that are sliced away after the kernel.
    x_flat = xs.reshape(N, C_in, Hs * Ws)
    if Lx > Hs * Ws:
        x_flat = jnp.pad(x_flat, ((0, 0), (0, 0), (0, Lx - Hs * Ws)))
    elif Lx < Hs * Ws:
        x_flat = x_flat[:, :, :Lx]

    # Explicit VMEM budget (double-buffered x/out + resident weights).
    est = (2 * (C_in * Lx * in_isz + C_out * tile * out_isz)
           + T * C_out * C_in * in_isz + C_out * 4)
    vmem_limit = int(min(max(2 * est + (4 << 20), 32 << 20), 64 << 20))

    cost = pl.CostEstimate(
        flops=2 * N * T * C_out * C_in * P_pad,
        transcendentals=0,
        bytes_accessed=(N * C_in * Lx * in_isz
                        + T * C_out * C_in * in_isz
                        + N * C_out * P_pad * out_isz))

    kernel = functools.partial(_conv_bn_prelu_kernel, tap_offsets=offs,
                               tile=tile, apply_prelu=prelu)
    out = pl.pallas_call(
        kernel,
        out_shape=jax.ShapeDtypeStruct((N, C_out, P_pad), out_dtype),
        grid_spec=pltpu.PrefetchScalarGridSpec(
            num_scalar_prefetch=0,
            grid=grid,
            in_specs=[
                # PReLU alpha: scalar in SMEM (no padded VMEM tile).
                pl.BlockSpec(memory_space=pltpu.MemorySpace.SMEM),
                w_spec,   # folded per-tap weights, VMEM-resident
                b_spec,   # folded bias, VMEM-resident
                x_spec,   # flat activations
            ],
            out_specs=o_spec,
        ),
        compiler_params=pltpu.CompilerParams(
            dimension_semantics=dims, vmem_limit_bytes=vmem_limit),
        cost_estimate=cost,
    )(alpha_arr, w_taps, b_vec, x_flat)

    # Valid outputs live at flat positions ho*pitch + wo with wo < Wo.
    out = out[:, :, :Ho * pitch].reshape(N, C_out, Ho, pitch)[:, :, :, :Wo]
    return out.astype(out_dtype)


def _reference(x, params, *, k=1, s=1, p=0, bn=True, prelu=True, eps=1e-5):
    """Pure-JAX f32 reference matching the PyTorch forward pass (eval mode)."""
    w, b, gamma, beta, mean, var, alpha = params
    y = lax.conv_general_dilated(
        x, w, window_strides=(s, s), padding=[(p, p), (p, p)],
        dimension_numbers=('NCHW', 'OIHW', 'NCHW'))
    y = y + b[None, :, None, None]
    if bn:
        y = ((y - mean[None, :, None, None])
             * lax.rsqrt(var[None, :, None, None] + eps)
             * gamma[None, :, None, None] + beta[None, :, None, None])
    if prelu:
        y = jnp.where(y > 0, y, y * alpha)
    return y


def make_params(key, c_in, c_out, k):
    """Deterministic synthetic Conv2d + BatchNorm2d + PReLU parameters."""
    ks = jax.random.split(key, 6)
    w = jax.random.normal(ks[0], (c_out, c_in, k, k), jnp.float32) * 0.2
    b = jax.random.normal(ks[1], (c_out,), jnp.float32) * 0.1
    gamma = 1.0 + 0.2 * jax.random.normal(ks[2], (c_out,), jnp.float32)
    beta = 0.1 * jax.random.normal(ks[3], (c_out,), jnp.float32)
    mean = 0.1 * jax.random.normal(ks[4], (c_out,), jnp.float32)
    var = 0.5 + jnp.abs(jax.random.normal(ks[5], (c_out,), jnp.float32))
    alpha = jnp.asarray(0.25, jnp.float32)   # nn.PReLU() default single alpha
    return (w, b, gamma, beta, mean, var, alpha)


if __name__ == "__main__":
    key = jax.random.PRNGKey(0)
    configs = [
        # Module defaults: k=1, s=1, p=0, bn=True, prelu=True.
        dict(N=2, C_in=8, C_out=8, H=16, W=16, k=1, s=1, p=0, bn=True, prelu=True),
        # Strided 3x3 conv with padding (exercises the phase + tap path).
        dict(N=2, C_in=8, C_out=16, H=16, W=16, k=3, s=2, p=1, bn=True, prelu=True),
        # bn=False / prelu=False branches, stride-1 3x3 taps.
        dict(N=1, C_in=4, C_out=8, H=12, W=12, k=3, s=1, p=1, bn=False, prelu=False),
    ]

    for idx, cfg in enumerate(configs):
        key, kx, kp = jax.random.split(key, 3)
        x = jax.random.normal(
            kx, (cfg["N"], cfg["C_in"], cfg["H"], cfg["W"]), jnp.float32)
        params = make_params(kp, cfg["C_in"], cfg["C_out"], cfg["k"])
        kw = dict(k=cfg["k"], s=cfg["s"], p=cfg["p"],
                  bn=cfg["bn"], prelu=cfg["prelu"])

        ref = jax.block_until_ready(_reference(x, params, **kw))

        # f32 compute path: tight check of the tap/phase algorithm itself.
        out32 = jax.block_until_ready(
            conv_bn_prelu(x, params, compute_dtype=jnp.float32, **kw))
        assert out32.shape == ref.shape, (
            f"config {idx}: shape {out32.shape} vs {ref.shape}")
        err32 = jnp.max(jnp.abs(out32 - ref))
        assert jnp.allclose(out32, ref, rtol=1e-3, atol=1e-3), (
            f"config {idx} (f32): max abs err {err32}")

        # bf16 compute path (performance default): bf16-appropriate tolerance.
        out16 = jax.block_until_ready(conv_bn_prelu(x, params, **kw))
        assert out16.shape == ref.shape, (
            f"config {idx}: shape {out16.shape} vs {ref.shape}")
        err16 = jnp.max(jnp.abs(out16 - ref))
        assert jnp.allclose(out16, ref, rtol=4e-2, atol=4e-2), (
            f"config {idx} (bf16): max abs err {err16}")

    print("KERNEL_OK")
</pallas_src>

<mosaic_0001>
module attributes {stable_mosaic.version = 11 : i64} {
  func.func @_conv_bn_prelu_kernel(%arg0: i32, %arg1: i32, %arg2: memref<1xf32, #tpu.memory_space<smem>>, %arg3: memref<1x8x8xf32, #tpu.memory_space<vmem>>, %arg4: memref<8x1xf32, #tpu.memory_space<vmem>>, %arg5: memref<1x8x256xf32, #tpu.memory_space<vmem>>, %arg6: memref<1x8x256xf32, #tpu.memory_space<vmem>>) attributes {dimension_semantics = [#tpu.dimension_semantics<parallel>, #tpu.dimension_semantics<parallel>], iteration_bounds = array<i64: 2, 1>, scalar_prefetch = 0 : i64, scratch_operands = 0 : i64, tpu.core_type = #tpu.core_type<tc>, window_params = [{transform_indices = @transform_0, window_bounds = array<i64: 1>}, {pipeline_mode = #tpu.pipeline_mode<synchronous>, transform_indices = @transform_1, window_bounds = array<i64: 1, 8, 8>}, {pipeline_mode = #tpu.pipeline_mode<synchronous>, transform_indices = @transform_2, window_bounds = array<i64: 8, 1>}, {transform_indices = @transform_3, window_bounds = array<i64: 1, 8, 256>}, {transform_indices = @transform_4, window_bounds = array<i64: 1, 8, 256>}]} {
    %c0 = arith.constant 0 : index
    %c0_0 = arith.constant 0 : index
    %c0_1 = arith.constant 0 : index
    %0 = vector.load %arg5[%c0, %c0_0, %c0_1] : memref<1x8x256xf32, #tpu.memory_space<vmem>>, vector<1x8x256xf32>
    %1 = vector.shape_cast %0 : vector<1x8x256xf32> to vector<8x256xf32>
    %c0_2 = arith.constant 0 : index
    %c0_3 = arith.constant 0 : index
    %c0_4 = arith.constant 0 : index
    %2 = vector.load %arg3[%c0_2, %c0_3, %c0_4] : memref<1x8x8xf32, #tpu.memory_space<vmem>>, vector<1x8x8xf32>
    %3 = vector.shape_cast %2 : vector<1x8x8xf32> to vector<8x8xf32>
    %cst = arith.constant dense<0.000000e+00> : vector<8x256xf32>
    %4 = tpu.matmul %3, %1, %cst {dimension_numbers = #tpu.dot_dimension_numbers<[1], [0], [0], [1], [0, 0, 1, 1], [], []>} : vector<8x8xf32>, vector<8x256xf32>, vector<8x256xf32> -> vector<8x256xf32>
    %c0_5 = arith.constant 0 : index
    %c0_6 = arith.constant 0 : index
    %5 = vector.load %arg4[%c0_5, %c0_6] : memref<8x1xf32, #tpu.memory_space<vmem>>, vector<8x1xf32>
    %6 = vector.broadcast %5 : vector<8x1xf32> to vector<8x256xf32>
    %7 = arith.addf %4, %6 : vector<8x256xf32>
    %c0_7 = arith.constant 0 : index
    %8 = memref.load %arg2[%c0_7] : memref<1xf32, #tpu.memory_space<smem>>
    %cst_8 = arith.constant 0.000000e+00 : f32
    %9 = vector.broadcast %cst_8 : f32 to vector<8x256xf32>
    %10 = arith.cmpf ogt, %7, %9 : vector<8x256xf32>
    %11 = vector.broadcast %8 : f32 to vector<8x256xf32>
    %12 = arith.mulf %7, %11 : vector<8x256xf32>
    %13 = arith.select %10, %7, %12 : vector<8x256xi1>, vector<8x256xf32>
    %c0_9 = arith.constant 0 : index
    %c0_10 = arith.constant 0 : index
    %c0_11 = arith.constant 0 : index
    %14 = vector.load %arg6[%c0_9, %c0_10, %c0_11] : memref<1x8x256xf32, #tpu.memory_space<vmem>>, vector<1x8x256xf32>
    %15 = vector.shape_cast %14 : vector<1x8x256xf32> to vector<8x256xf32>
    %16 = vector.shape_cast %13 : vector<8x256xf32> to vector<1x8x256xf32>
    tpu.vector_store %arg6[%c0_9, %c0_10, %c0_11], %16 {strides = array<i32>} : memref<1x8x256xf32, #tpu.memory_space<vmem>>, vector<1x8x256xf32>,
    return
  }
  func.func @transform_0(%arg0: i32, %arg1: i32) -> i32 {
    %c0_i32 = arith.constant 0 : i32
    %c0_i32_0 = arith.constant 0 : i32
    return %c0_i32 : i32
  }
  func.func @transform_1(%arg0: i32, %arg1: i32) -> (i32, i32, i32) {
    %c0_i32 = arith.constant 0 : i32
    %c0_i32_0 = arith.constant 0 : i32
    %c0_i32_1 = arith.constant 0 : i32
    %c0_i32_2 = arith.constant 0 : i32
    return %c0_i32, %c0_i32_0, %c0_i32_1 : i32, i32, i32
  }
  func.func @transform_2(%arg0: i32, %arg1: i32) -> (i32, i32) {
    %c0_i32 = arith.constant 0 : i32
    %c0_i32_0 = arith.constant 0 : i32
    %c0_i32_1 = arith.constant 0 : i32
    return %c0_i32, %c0_i32_0 : i32, i32
  }
  func.func @transform_3(%arg0: i32, %arg1: i32) -> (i32, i32, i32) {
    %c0_i32 = arith.constant 0 : i32
    %c0_i32_0 = arith.constant 0 : i32
    return %arg0, %c0_i32, %arg1 : i32, i32, i32
  }
  func.func @transform_4(%arg0: i32, %arg1: i32) -> (i32, i32, i32) {
    %c0_i32 = arith.constant 0 : i32
    %c0_i32_0 = arith.constant 0 : i32
    return %arg0, %c0_i32, %arg1 : i32, i32, i32
  }
}

</mosaic_0001>

<bundles_post_ra>
// kernel: tpu_custom_call.1
= control target key start
LH: loop header
LB: loop body
LE: loop exit
PB: predicated region body
PF: predicated region fallthrough
CT: control target
= control target key end

     0   :  { %s837_s0 = inlined_call_operand.<no memory space> [shape: f32[1], index: 0, kind: input, shape index: {}]   ;;  %s838_s1 = inlined_call_operand.vmem [shape: f32[1,8,8], index: 1, kind: input, shape index: {}]   ;;  %s839_s2 = inlined_call_operand.vmem [shape: f32[8,1], index: 2, kind: input, shape index: {}]   ;;  %s840_s3 = inlined_call_operand.hbm [shape: f32[2,8,256], index: 3, kind: input, shape index: {}]   ;;  %s841_s4 = inlined_call_operand.hbm [shape: f32[2,8,256], index: 4, kind: output, shape index: {}]  }
   0x1   :  { %9 = sst [smem:[#allocation2]] %s837_s0 }
   0x2   :  { %10 = vsyncpa [#allocation4], 0 }
   0x3   :  { %12 = vsyncpa [#allocation4 + $0x1], 0 }
   0x4   :  { %13 = vsyncpa [#allocation5], 0 }
   0x5   :  { %15 = vsyncpa [#allocation5 + $0x1], 0  ;;  %s659_s17 = smov 0   ;;  %s661_s18 = smov 0  }
   0x6   :  { %s663_s19 = smov 0   ;;  %s665_s20 = smov 0  }
   0x7   :  { %s667_s21 = smov 0   ;;  %s669_s22 = smov 0  }
   0x8 LB: > { %s430_s0 = sadd.s32 4294967295, %s625_s22   ;;  %s431_s23 = sadd.s32 4294967294, %s625_s22   ;;  %s625_s22 = sphi %s669_s22, %s21_s22   ;;  %s621_s21 = sphi %s667_s21, %s857_s21   ;;  %s617_s20 = sphi %s665_s20, %s856_s20   ;;  %s613_s19 = sphi %s663_s19, %s855_s19   ;;  %s609_s18 = sphi %s661_s18, %s854_s18   ;;  %s605_s17 = sphi %s659_s17, %s853_s17  }
   0x9   : > { %s33_s24 = sadd.s32 1, %s621_s21  ;;  %s105_s25 = sadd.s32 1, %s613_s19 }
   0xa   : > { %p35_p0 = scmp.ge.s32.totalorder %s33_s24, 2  ;;  %p112_p1 = scmp.ne.s32.totalorder %s613_s19, %s609_s18 }
   0xb   : > { %p113_p2 = scmp.eq.s32.totalorder %s625_s22, 0  ;;  %p118_p3 = scmp.ne.s32.totalorder %s609_s18, %s605_s17 }
   0xc   : > { %s859_s24 = smov (%p35_p0, %s33_s24), 0  ;;  %p119_p5 = scmp.eq.s32.totalorder %s430_s0, 0 }
   0xd   : > { %p700_p4 = por %p113_p2, %p112_p1  ;;  %s100_s27 = ssub.s32 %s621_s21, %s859_s24 }
   0xe   : > { %p144_p6 = scmp.eq.s32.totalorder %s430_s0, 1  ;;  %p103_p7 = scmp.eq.s32.totalorder %s100_s27, 0 }
   0xf   : > { %p706_p8 = por %p119_p5, %p118_p3  ;;  %p150_p10 = scmp.eq.s32.totalorder %s431_s23, 1 }
  0x10   : > { %p710_p9 = por %p144_p6, %p112_p1  ;;  %p460_p13 = scmp.lt.s32.totalorder %s625_s22, 2 }
  0x11   : > { %s715_s30 = scalar_select %p103_p7, %s613_s19, %s105_s25  }
  0x12   : > { %s845_s29 = scalar_select %p710_p9, 1, 0 }
  0x13   : > { %p717_p11 = por %p150_p10, %p118_p3  ;;  %s179_s6 = sand.u32 1, %s613_s19  }
  0x14   : > { %s434_s7 = sshll.u32 %s179_s6, 4  ;;  %s446_s8 = sshll.u32 %s621_s21, 8 }
  0x15   : > { %s846_s5 = scalar_select %p717_p11, 1, 0 }
  0x16   : > { %s728_s11 = scalar_lea.hbm %s840_s3, %s446_s8  ;;  %s183_s12 = scalar_lea.vmem [#allocation3], %s434_s7 }
  0x17   : > { %s193_s13 = sshll.u32 %s183_s12, 4  ;;  %p734_p0 = pnand %p460_p13, %p700_p4  ;;  %s730_s13 = int_to_ptr.vmem [resolvable:$true] %s193_s13 }
  0x18   : > { %s180_s15 = scalar_lea.sflag [#allocation4], %s179_s6  ;;  %s513_s16 = scalar_lea.hbm %s728_s11, 256 }
  0x19   : > { %p514_p3 = scmp.ne.s32.totalorder %s728_s11, %s513_s16  ;;  %p515_p5 = pneg %p734_p0 }
  0x1a   : > { %s518_s25 = scalar_lea.hbm %s840_s3, 512  ;;  %p519_p4 = scmp.lt.u32.totalorder %s728_s11, %s840_s3 }
  0x1b   : > { %p516_p6 = pnand %p515_p5, %p514_p3  ;;  %p520_p10 = scmp.lt.u32.totalorder %s518_s25, %s513_s16 }
  0x1c   : > { %p522_p12 = scmp.lt.u32.totalorder %s513_s16, %s728_s11 }
  0x1d   : > { %p517_p7 = pneg %p516_p6  ;;  %p521_p13 = por %p520_p10, %p519_p4 }
  0x1f   : > { %p523_p1 = por %p522_p12, %p521_p13 }
  0x21   : > { %p524_p2 = pnand %p523_p1, %p517_p7 }
  0x23   : > { %527 = shalt.err (!%p524_p2)
}
  0x24   : > { %s528_s6 = scalar_lea.vmem %s730_s13, 256  ;;  %s627_s7 = smov [#allocation3]  }
  0x25   : > { %p529_p3 = scmp.ne.s32.totalorder %s730_s13, %s528_s6  ;;  %s533_s8 = sshll.u32 %s627_s7, 4  ;;  %s534_s8 = int_to_ptr.vmem [resolvable:$false] %s533_s8 }
  0x26   : > { %s535_s9 = scalar_lea.vmem %s534_s8, 512  ;;  %p536_p9 = scmp.lt.s32.totalorder %s730_s13, %s534_s8 }
  0x27   : > { %p531_p6 = pnand %p529_p3, %p515_p5  ;;  %p537_p4 = scmp.lt.s32.totalorder %s535_s9, %s528_s6 }
  0x29   : > { %p532_p11 = pneg %p531_p6  ;;  %p538_p10 = por %p537_p4, %p536_p9 }
  0x2b   : > { %p539_p12 = pnand %p538_p10, %p532_p11 }
  0x2d   : > { %542 = shalt.err (!%p539_p12)
}
  0x2e   : > { %455 = dma.hbm_to_vmem [thread:$0]  (!%p734_p0), %s728_s11, 256, %s730_s13, %s180_s15  }
  0x2f   : > { %p848_p1 = scmp.lt.s32.totalorder %s625_s22, 3  ;;  %p849_p2 = scmp.ge.s32.totalorder %s625_s22, 1 }
  0x31   : > { %p199_p5 = pnand %p849_p2, %p848_p1 }
  0x32   : > { %s770_s10 = sand.u32 (!%p199_p5), 1, %s609_s18  }
  0x33   : > { %202 = sbr.rel (%p199_p5) target bundleno = 295 (0x127), region = 36  ;;  %s438_s12 = sshll.u32 (!%p199_p5), %s770_s10, 4 }
  0x34   : > { %s205_s16 = scalar_lea.sflag (!%p199_p5), [#allocation4], %s770_s10  ;;  %s208_s0 = scalar_lea.vmem (!%p199_p5), [#allocation3], %s438_s12 }
  0x3a   : > { %596 = dma.done.wait (%p706_p8), %s205_s16, 256  }
  0x3b   : > { %598 = vsyncadd (%p706_p8), %s205_s16, 4294967040  ;;  %v628_v0 = vmov 0.0   ;;  %v629_v1 = vmov 0   ;;  %v236_v2 = vld [vmem:[%s208_s0 + $0x8] sm:$0xff]  ;;  %v235_v3 = vld [vmem:[%s208_s0] sm:$0xff]  ;;  %vm244_vm0 = vcmask 64512  }
  0x3c   : > { %312 = vmatprep.mubr.f32.mxu0 %v628_v0  ;;  %512 = vset.pattern.permute.xlu0 %v629_v1  ;;  %v237_v4 = vld [vmem:[%s838_s1] sm:$0xff]  ;;  %s319_s28 = sld [smem:[#allocation2]]  ;;  %s447_s23 = sshll.u32 %s617_s20, 8 }
  0x3d   : > { %248 = vmatprep.subr.mxu0 %v236_v2  ;;  %v238_v5 = vld [vmem:[%s839_s2] sm:$0xff]  ;;  %s232_s25 = scalar_lea.vmem [#allocation6], %s438_s12  ;;  %s788_s7 = scalar_lea.hbm %s841_s4, %s447_s23 }
  0x3e   : > { %249 = vmatpush1.msra.mxu0 %v235_v3  ;;  %241 = vperm.xlu0 %512, %v238_v5   ;;  %s346_s26 = sshll.u32 %s232_s25, 4  ;;  %s330_s20 = scalar_lea.sflag [#allocation5], %s770_s10  ;;  %s790_s26 = int_to_ptr.vmem [resolvable:$true] %s346_s26 }
  0x3f   : > { %440 = vmatmul.mubr.msk.f32.vlgmr.msra.gmra.mrb[0].mxu0 %vm244_vm0, %v237_v4  ;;  %s543_s8 = scalar_lea.vmem %s790_s26, 256  ;;  %p850_p9 = scmp.ne.s32.totalorder %s845_s29, 0 }
  0x40   : > { %p544_p8 = scmp.ne.s32.totalorder %s790_s26, %s543_s8  ;;  %s630_s9 = smov [#allocation6]  }
  0x41   : > { %s547_s12 = sshll.u32 %s630_s9, 4  ;;  %s548_s12 = int_to_ptr.vmem [resolvable:$false] %s547_s12 }
  0x42   : > { %v322_v8 = vstv %s319_s28  ;;  %p545_p11 = pnand %p544_p8, %p850_p9  ;;  %s549_s16 = scalar_lea.vmem %s548_s12, 512 }
  0x43   : > { %p550_p7 = scmp.lt.s32.totalorder %s790_s26, %s548_s12  ;;  %p551_p13 = scmp.lt.s32.totalorder %s549_s16, %s543_s8 }
  0x44   : > { %p546_p0 = pneg %p545_p11 }
  0x45   : > { %p552_p3 = por %p551_p13, %p550_p7 }
  0x47   : > { %p553_p6 = pnand %p552_p3, %p546_p0 }
  0xbd   : > { %v242_v6 = vpop.permute.xlu0 %241 }
 0x112   : > { %v314_v7 = vpop.f32.mrb[0].mxu0 }
 0x113   : > { %v315_v9 = vadd.f32 %v314_v7, %v242_v6  ;;  %v316_v10 = vpop.f32.mrb[1].mxu0 }
 0x114   : > { %v317_v11 = vadd.f32 %v316_v10, %v242_v6 }
 0x115   : > { %vm320_vm1 = vcmp.gt.f32.partialorder %v315_v9, 0.0  ;;  %v323_v12 = vmul.f32 %v322_v8, %v315_v9 }
 0x116   : > { %vm321_vm2 = vcmp.gt.f32.partialorder %v317_v11, 0.0  ;;  %v324_v13 = vmul.f32 %v322_v8, %v317_v11 }
 0x117   : > { %v325_v14 = vsel %vm320_vm1, %v315_v9, %v323_v12 }
 0x118   : > { %327 = vst [vmem:[%s232_s25] sm:$0xff] %v325_v14  ;;  %v326_v15 = vsel %vm321_vm2, %v317_v11, %v324_v13 }
 0x119   : > { %328 = vst [vmem:[%s232_s25 + $0x8] sm:$0xff] %v326_v15 }
 0x11a   : > { %556 = shalt.err (!%p553_p6)
}
 0x11b   : > { %s557_s10 = scalar_lea.hbm %s788_s7, 256  ;;  %s561_s13 = scalar_lea.hbm %s841_s4, 512 }
 0x11c   : > { %p558_p4 = scmp.ne.s32.totalorder %s788_s7, %s557_s10  ;;  %p562_p1 = scmp.lt.u32.totalorder %s788_s7, %s841_s4 }
 0x11d   : > { %p563_p2 = scmp.lt.u32.totalorder %s561_s13, %s557_s10  ;;  %p565_p8 = scmp.lt.u32.totalorder %s557_s10, %s788_s7 }
 0x11e   : > { %p559_p10 = pnand %p558_p4, %p850_p9 }
 0x11f   : > { %p564_p5 = por %p563_p2, %p562_p1 }
 0x120   : > { %p560_p12 = pneg %p559_p10 }
 0x121   : > { %p566_p11 = por %p565_p8, %p564_p5 }
 0x123   : > { %p567_p0 = pnand %p566_p11, %p560_p12 }
 0x125   : > { %570 = shalt.err (!%p567_p0)
}
 0x126   : > { %450 = dma.vmem_to_hbm [thread:$0]  (%p850_p9), %s790_s26, 256, %s788_s7, %s330_s20  }
 0x127 PF: > { %s358_s28 = sand.u32 1, %s605_s17   ;;  %p851_p7 = scmp.ne.s32.totalorder %s846_s5, 0 }
 0x128   : > { %p852_p13 = scmp.ge.s32.totalorder %s625_s22, 2  ;;  %s359_s23 = scalar_lea.sflag [#allocation5], %s358_s28 }
 0x12a   : > { %p457_p3 = pnand %p852_p13, %p851_p7 }
 0x12c   : > { %600 = dma.done.wait (!%p457_p3), %s359_s23, 256  }
 0x12d   : > { %602 = vsyncadd (!%p457_p3), %s359_s23, 4294967040  ;;  %s21_s22 = sadd.s32 1, %s625_s22   ;;  %s853_s17 = smov %s609_s18 }
 0x12e   : > { %p18_p6 = scmp.ge.s32.totalorder %s21_s22, 4   ;;  %s854_s18 = smov %s613_s19 }
 0x12f   : > { %s855_s19 = smov %s715_s30  ;;  %s856_s20 = smov %s621_s21 }
 0x130   : > { %s857_s21 = smov %s859_s24  ;;  %20 = sbr.rel (!%p18_p6) target bundleno = 8 (0x8), region = 81 }
 0x137   :  { %364 = vsyncpa [#allocation4], 1 }
 0x138   :  { %366 = vsyncpa [#allocation4 + $0x1], 1 }
 0x139   :  { %367 = vsyncpa [#allocation5], 1 }
 0x13a   :  { %369 = vsyncpa [#allocation5 + $0x1], 1 }

</bundles_post_ra>
